<compile_context>
chip_gen: v7x
topology: tpu7x:2x2x1
jax: 0.10.0
libtpu: 0.0.40
codegen_flags: <defaults>
</compile_context>

<pallas_src>
import functools
import math

import jax
import jax.numpy as jnp
from jax.experimental import pallas as pl
from jax.experimental.pallas import tpu as pltpu


def _leaky_relu(x, slope=0.2):
    return jnp.where(x > 0, x, slope * x)


def discriminator_kernel(x_ref, w1_ref, b1_ref, w2_ref, b2_ref, w3_ref, b3_ref,
                         o_ref):
    """One batch tile (TB rows) of the 3-layer MLP, fully resident in VMEM.

    x_ref : (TB, Dp)  f32|bf16    w1_ref: (Dp, 512) bf16   b1_ref: (1, 512) f32
    w2_ref: (512, 256) bf16       b2_ref: (1, 256)  f32
    w3_ref: (1, 256)   f32        b3_ref: (1,)      f32 (SMEM scalar)
    o_ref : (1, TB)    f32        -- lane-dense: batch on the lane axis
    """
    # Layer 1: bf16 MXU matmul, f32 accumulate, f32 epilogue.  The bf16 cast of
    # x (when it arrives as f32) is VPU work hidden under the MXU.
    x = x_ref[...].astype(jnp.bfloat16)
    h1 = jnp.dot(x, w1_ref[...], preferred_element_type=jnp.float32)
    h1 = _leaky_relu(h1 + b1_ref[...])                          # (TB, 512) f32

    # Layer 2: cast activation back to bf16 only for the MXU operand.
    h2 = jnp.dot(h1.astype(jnp.bfloat16), w2_ref[...],
                 preferred_element_type=jnp.float32)
    h2 = _leaky_relu(h2 + b2_ref[...])                          # (TB, 256) f32

    # Layer 3 (256 -> 1): VPU multiply + cross-lane (XLU) reduce; an N=1 MXU
    # matmul would waste all but one output column of the systolic array.
    logit = jnp.sum(h2 * w3_ref[...], axis=-1) + b3_ref[0]      # (TB,) f32

    # Sigmoid with the divide routed to the EUP reciprocal slot; clamp so the
    # approximate reciprocal cannot leak probabilities outside [0, 1].
    prob = pl.reciprocal(1.0 + jnp.exp(-logit), approx=True)
    prob = jnp.clip(prob, 0.0, 1.0)

    o_ref[...] = prob[None, :].astype(o_ref.dtype)              # (1, TB)


def prepare_params(params):
    """One-time conversion of f32 nn.Linear-style params to the kernel layout.

    Call ONCE outside the per-step forward: the bf16 weight cast and the
    feature-dim zero pad of W1 are HBM passes that should not be re-paid on
    every call.
    """
    w1, b1, w2, b2, w3, b3 = params
    D = w1.shape[0]
    Dp = ((D + 127) // 128) * 128
    w1_bf = jnp.pad(w1, ((0, Dp - D), (0, 0))).astype(jnp.bfloat16)  # (Dp, 512)
    w2_bf = w2.astype(jnp.bfloat16)                                  # (512, 256)
    b1_2d = b1.reshape(1, 512).astype(jnp.float32)
    b2_2d = b2.reshape(1, 256).astype(jnp.float32)
    w3_row = w3.reshape(1, 256).astype(jnp.float32)
    b3_s = b3.reshape(1).astype(jnp.float32)
    return (w1_bf, b1_2d, w2_bf, b2_2d, w3_row, b3_s)


@functools.partial(jax.jit, static_argnames=("batch_tile",))
def discriminator_forward(img, prepared, *, batch_tile=256):
    """img: (B, C, H, W) float32.  Returns (B, 1) float32 probabilities."""
    w1_bf, b1_2d, w2_bf, b2_2d, w3_row, b3_s = prepared
    B = img.shape[0]
    D = int(math.prod(img.shape[1:]))
    Dp = w1_bf.shape[0]
    x = img.reshape(B, D)                          # same as img.view(B, -1)

    # Feature-dim (contraction) padding must be explicit zeros (garbage * 0 can
    # be NaN).  Fuse it with the bf16 cast so x is touched exactly once.  When
    # D is already lane-aligned, x is passed through as f32 and cast in-kernel.
    if Dp != D:
        x = jnp.pad(x.astype(jnp.bfloat16), ((0, 0), (0, Dp - D)))

    # Batch tiling.  No batch padding: the grid rounds up and the (masked)
    # last x block may read past the array; the garbage rows only pollute
    # output columns that are sliced away below.
    # TODO(synk): on v7x (2 TensorCores) pick TB ~ ceil(B/2) rounded to 256 so
    # both cores get a grid step; on v5e/v6e (1 TC) just maximize TB.
    TB = B if B <= batch_tile else batch_tile
    n_tiles = pl.cdiv(B, TB)
    Bp = n_tiles * TB

    # Size-derived VMEM cap: double-buffered x/out tiles, single-buffered
    # weights, f32 activation temporaries, plus generous headroom.
    tile_bytes = (
        2 * TB * Dp * x.dtype.itemsize             # x tile (double-buffered)
        + Dp * 512 * 2 + 512 * 256 * 2             # bf16 weights (Buffered(1))
        + (512 + 256 + 256 + 1) * 4                # f32 biases / W3 row
        + 2 * TB * 4                               # (1, TB) out tile (x2)
        + TB * (512 + 512 + 256 + 256) * 4         # f32 activations / temps
    )
    vmem_limit = int(min(max(4 * tile_bytes, 16 * 1024 * 1024),
                         48 * 1024 * 1024))

    # TODO(synk): for very large D (>= ~8K) on v7x, K-tile layer 1 (reduction
    # grid axis marked "arbitrary", W1 block (tk, 512), f32 accumulator zeroed
    # at k == 0) to keep the working set inside 64 MiB VMEM.

    def const_spec(shape):
        # Block index never changes -> single-buffer to halve VMEM footprint.
        return pl.BlockSpec(shape, lambda i: (0, 0),
                            pipeline_mode=pl.Buffered(1))

    out = pl.pallas_call(
        discriminator_kernel,
        out_shape=jax.ShapeDtypeStruct((1, Bp), jnp.float32),
        grid_spec=pltpu.PrefetchScalarGridSpec(
            num_scalar_prefetch=0,
            grid=(n_tiles,),
            in_specs=[
                pl.BlockSpec((TB, Dp), lambda i: (i, 0)),          # x tile
                const_spec((Dp, 512)),                             # W1 (bf16)
                const_spec((1, 512)),                              # b1 (f32)
                const_spec((512, 256)),                            # W2 (bf16)
                const_spec((1, 256)),                              # b2 (f32)
                const_spec((1, 256)),                              # W3 row (f32)
                pl.BlockSpec(memory_space=pltpu.MemorySpace.SMEM),  # b3 scalar
            ],
            # Lane-dense output: each grid step writes one (1, TB) slab of a
            # single (1, Bp) row -> unmasked stores for TB >= 128.
            out_specs=pl.BlockSpec((1, TB), lambda i: (0, i)),
        ),
        compiler_params=pltpu.CompilerParams(
            dimension_semantics=("parallel",),
            vmem_limit_bytes=vmem_limit,
        ),
    )(x, w1_bf, b1_2d, w2_bf, b2_2d, w3_row, b3_s)

    # (1, Bp) -> (Bp, 1) -> (B, 1)
    return out.reshape(Bp, 1)[:B]


def init_params(key, in_features):
    """Deterministic init mirroring nn.Linear shapes (stored transposed (in,out))."""
    def linear(key, fan_in, fan_out):
        kw, kb = jax.random.split(key)
        bound = 1.0 / jnp.sqrt(jnp.float32(fan_in))
        w = jax.random.uniform(kw, (fan_in, fan_out), jnp.float32, -bound, bound)
        b = jax.random.uniform(kb, (1, fan_out), jnp.float32, -bound, bound)
        return w, b

    k1, k2, k3 = jax.random.split(key, 3)
    w1, b1 = linear(k1, in_features, 512)
    w2, b2 = linear(k2, 512, 256)
    w3, b3 = linear(k3, 256, 1)
    return (w1, b1, w2, b2, w3, b3)


def reference_forward(img, params):
    """Pure-JAX f32 reference for correctness check."""
    w1, b1, w2, b2, w3, b3 = params
    x = img.reshape(img.shape[0], -1)
    h = x @ w1 + b1
    h = jnp.where(h > 0, h, 0.2 * h)
    h = h @ w2 + b2
    h = jnp.where(h > 0, h, 0.2 * h)
    return jax.nn.sigmoid(h @ w3 + b3)


if __name__ == "__main__":
    key = jax.random.PRNGKey(0)
    k_img, k_par = jax.random.split(key)

    # img_shape = (C, H, W) = (1, 16, 16) -> D = 256; batch = 2
    B, C, H, W = 2, 1, 16, 16
    img = jax.random.normal(k_img, (B, C, H, W), dtype=jnp.float32)
    params = init_params(k_par, C * H * W)
    prepared = prepare_params(params)          # one-time bf16 cast / pad

    out = discriminator_forward(img, prepared)
    out = jax.block_until_ready(out)

    ref = reference_forward(img, params)
    assert out.shape == (B, 1), out.shape
    assert bool(jnp.all((out >= 0.0) & (out <= 1.0)))
    # bf16 MXU operands + approx reciprocal -> compare with a looser tolerance.
    assert jnp.allclose(out, ref, atol=2e-2, rtol=0.0), (out, ref)

    print("KERNEL_OK")
</pallas_src>

<mosaic_0001>
module attributes {stable_mosaic.version = 11 : i64} {
  func.func @discriminator_kernel(%arg0: i32, %arg1: memref<2x256xf32, #tpu.memory_space<vmem>>, %arg2: memref<256x512xbf16, #tpu.memory_space<vmem>>, %arg3: memref<1x512xf32, #tpu.memory_space<vmem>>, %arg4: memref<512x256xbf16, #tpu.memory_space<vmem>>, %arg5: memref<1x256xf32, #tpu.memory_space<vmem>>, %arg6: memref<1x256xf32, #tpu.memory_space<vmem>>, %arg7: memref<1xf32, #tpu.memory_space<smem>>, %arg8: memref<1x2xf32, #tpu.memory_space<vmem>>) attributes {dimension_semantics = [#tpu.dimension_semantics<parallel>], iteration_bounds = array<i64: 1>, scalar_prefetch = 0 : i64, scratch_operands = 0 : i64, tpu.core_type = #tpu.core_type<tc>, window_params = [{transform_indices = @transform_0, window_bounds = array<i64: 2, 256>}, {pipeline_mode = #tpu.pipeline_mode<synchronous>, transform_indices = @transform_1, window_bounds = array<i64: 256, 512>}, {pipeline_mode = #tpu.pipeline_mode<synchronous>, transform_indices = @transform_2, window_bounds = array<i64: 1, 512>}, {pipeline_mode = #tpu.pipeline_mode<synchronous>, transform_indices = @transform_3, window_bounds = array<i64: 512, 256>}, {pipeline_mode = #tpu.pipeline_mode<synchronous>, transform_indices = @transform_4, window_bounds = array<i64: 1, 256>}, {pipeline_mode = #tpu.pipeline_mode<synchronous>, transform_indices = @transform_5, window_bounds = array<i64: 1, 256>}, {transform_indices = @transform_6, window_bounds = array<i64: 1>}, {transform_indices = @transform_7, window_bounds = array<i64: 1, 2>}]} {
    %c0 = arith.constant 0 : index
    %c0_0 = arith.constant 0 : index
    %0 = vector.load %arg1[%c0, %c0_0] : memref<2x256xf32, #tpu.memory_space<vmem>>, vector<2x256xf32>
    %1 = arith.truncf %0 : vector<2x256xf32> to vector<2x256xbf16>
    %c0_1 = arith.constant 0 : index
    %c0_2 = arith.constant 0 : index
    %2 = vector.load %arg2[%c0_1, %c0_2] : memref<256x512xbf16, #tpu.memory_space<vmem>>, vector<256x512xbf16>
    %cst = arith.constant dense<0.000000e+00> : vector<2x512xf32>
    %3 = tpu.matmul %1, %2, %cst {dimension_numbers = #tpu.dot_dimension_numbers<[1], [0], [0], [1], [0, 0, 1, 1], [], []>} : vector<2x256xbf16>, vector<256x512xbf16>, vector<2x512xf32> -> vector<2x512xf32>
    %c0_3 = arith.constant 0 : index
    %c0_4 = arith.constant 0 : index
    %4 = vector.load %arg3[%c0_3, %c0_4] : memref<1x512xf32, #tpu.memory_space<vmem>>, vector<1x512xf32>
    %5 = vector.broadcast %4 : vector<1x512xf32> to vector<2x512xf32>
    %6 = arith.addf %3, %5 : vector<2x512xf32>
    %cst_5 = arith.constant 0.000000e+00 : f32
    %7 = vector.broadcast %cst_5 : f32 to vector<2x512xf32>
    %8 = arith.cmpf ogt, %6, %7 : vector<2x512xf32>
    %cst_6 = arith.constant 2.000000e-01 : f32
    %9 = vector.broadcast %cst_6 : f32 to vector<2x512xf32>
    %10 = arith.mulf %9, %6 : vector<2x512xf32>
    %11 = arith.select %8, %6, %10 : vector<2x512xi1>, vector<2x512xf32>
    %12 = arith.truncf %11 : vector<2x512xf32> to vector<2x512xbf16>
    %c0_7 = arith.constant 0 : index
    %c0_8 = arith.constant 0 : index
    %13 = vector.load %arg4[%c0_7, %c0_8] : memref<512x256xbf16, #tpu.memory_space<vmem>>, vector<512x256xbf16>
    %cst_9 = arith.constant dense<0.000000e+00> : vector<2x256xf32>
    %14 = tpu.matmul %12, %13, %cst_9 {dimension_numbers = #tpu.dot_dimension_numbers<[1], [0], [0], [1], [0, 0, 1, 1], [], []>} : vector<2x512xbf16>, vector<512x256xbf16>, vector<2x256xf32> -> vector<2x256xf32>
    %c0_10 = arith.constant 0 : index
    %c0_11 = arith.constant 0 : index
    %15 = vector.load %arg5[%c0_10, %c0_11] : memref<1x256xf32, #tpu.memory_space<vmem>>, vector<1x256xf32>
    %16 = vector.broadcast %15 : vector<1x256xf32> to vector<2x256xf32>
    %17 = arith.addf %14, %16 : vector<2x256xf32>
    %cst_12 = arith.constant 0.000000e+00 : f32
    %18 = vector.broadcast %cst_12 : f32 to vector<2x256xf32>
    %19 = arith.cmpf ogt, %17, %18 : vector<2x256xf32>
    %cst_13 = arith.constant 2.000000e-01 : f32
    %20 = vector.broadcast %cst_13 : f32 to vector<2x256xf32>
    %21 = arith.mulf %20, %17 : vector<2x256xf32>
    %22 = arith.select %19, %17, %21 : vector<2x256xi1>, vector<2x256xf32>
    %c0_14 = arith.constant 0 : index
    %c0_15 = arith.constant 0 : index
    %23 = vector.load %arg6[%c0_14, %c0_15] : memref<1x256xf32, #tpu.memory_space<vmem>>, vector<1x256xf32>
    %24 = vector.broadcast %23 : vector<1x256xf32> to vector<2x256xf32>
    %25 = arith.mulf %22, %24 : vector<2x256xf32>
    %cst_16 = arith.constant dense<0.000000e+00> : vector<2xf32>
    %26 = vector.multi_reduction <add>, %25, %cst_16 [1] : vector<2x256xf32> to vector<2xf32>
    %c0_17 = arith.constant 0 : index
    %27 = memref.load %arg7[%c0_17] : memref<1xf32, #tpu.memory_space<smem>>
    %28 = vector.broadcast %27 : f32 to vector<2xf32>
    %29 = arith.addf %26, %28 : vector<2xf32>
    %cst_18 = arith.constant 0.000000e+00 : f32
    %30 = vector.broadcast %cst_18 : f32 to vector<2xf32>
    %31 = arith.subf %30, %29 : vector<2xf32>
    %32 = math.exp %31 : vector<2xf32>
    %cst_19 = arith.constant 1.000000e+00 : f32
    %33 = vector.broadcast %cst_19 : f32 to vector<2xf32>
    %34 = arith.addf %33, %32 : vector<2xf32>
    %35 = tpu.reciprocal %34 {approx = true} : vector<2xf32> -> vector<2xf32>
    %cst_20 = arith.constant 0.000000e+00 : f32
    %cst_21 = arith.constant 1.000000e+00 : f32
    %36 = vector.broadcast %cst_20 : f32 to vector<2xf32>
    %37 = arith.maximumf %36, %35 : vector<2xf32>
    %38 = vector.broadcast %cst_21 : f32 to vector<2xf32>
    %39 = arith.minimumf %38, %37 : vector<2xf32>
    %40 = vector.shape_cast %39 : vector<2xf32> to vector<1x2xf32>
    %c0_22 = arith.constant 0 : index
    %c0_23 = arith.constant 0 : index
    %41 = vector.load %arg8[%c0_22, %c0_23] : memref<1x2xf32, #tpu.memory_space<vmem>>, vector<1x2xf32>
    tpu.vector_store %arg8[%c0_22, %c0_23], %40 {strides = array<i32>} : memref<1x2xf32, #tpu.memory_space<vmem>>, vector<1x2xf32>,
    return
  }
  func.func @transform_0(%arg0: i32) -> (i32, i32) {
    %c0_i32 = arith.constant 0 : i32
    %c0_i32_0 = arith.constant 0 : i32
    return %arg0, %c0_i32 : i32, i32
  }
  func.func @transform_1(%arg0: i32) -> (i32, i32) {
    %c0_i32 = arith.constant 0 : i32
    %c0_i32_0 = arith.constant 0 : i32
    %c0_i32_1 = arith.constant 0 : i32
    return %c0_i32, %c0_i32_0 : i32, i32
  }
  func.func @transform_2(%arg0: i32) -> (i32, i32) {
    %c0_i32 = arith.constant 0 : i32
    %c0_i32_0 = arith.constant 0 : i32
    %c0_i32_1 = arith.constant 0 : i32
    return %c0_i32, %c0_i32_0 : i32, i32
  }
  func.func @transform_3(%arg0: i32) -> (i32, i32) {
    %c0_i32 = arith.constant 0 : i32
    %c0_i32_0 = arith.constant 0 : i32
    %c0_i32_1 = arith.constant 0 : i32
    return %c0_i32, %c0_i32_0 : i32, i32
  }
  func.func @transform_4(%arg0: i32) -> (i32, i32) {
    %c0_i32 = arith.constant 0 : i32
    %c0_i32_0 = arith.constant 0 : i32
    %c0_i32_1 = arith.constant 0 : i32
    return %c0_i32, %c0_i32_0 : i32, i32
  }
  func.func @transform_5(%arg0: i32) -> (i32, i32) {
    %c0_i32 = arith.constant 0 : i32
    %c0_i32_0 = arith.constant 0 : i32
    %c0_i32_1 = arith.constant 0 : i32
    return %c0_i32, %c0_i32_0 : i32, i32
  }
  func.func @transform_6(%arg0: i32) -> i32 {
    %c0_i32 = arith.constant 0 : i32
    %c0_i32_0 = arith.constant 0 : i32
    return %c0_i32 : i32
  }
  func.func @transform_7(%arg0: i32) -> (i32, i32) {
    %c0_i32 = arith.constant 0 : i32
    %c0_i32_0 = arith.constant 0 : i32
    return %c0_i32, %arg0 : i32, i32
  }
}

</mosaic_0001>

<bundles_post_ra>
// kernel: discriminator_forward.1
= control target key start
LH: loop header
LB: loop body
LE: loop exit
PB: predicated region body
PF: predicated region fallthrough
CT: control target
= control target key end

     0   :  { %13 = vsyncpa [#allocation4], 0  ;;  %s1661_s0 = inlined_call_operand.vmem [shape: f32[2,256], index: 0, kind: input, shape index: {}]   ;;  %s1662_s1 = inlined_call_operand.hbm [shape: bf16[256,512], index: 1, kind: input, shape index: {}]   ;;  %s1663_s2 = inlined_call_operand.vmem [shape: f32[1,512], index: 2, kind: input, shape index: {}]   ;;  %s1664_s3 = inlined_call_operand.hbm [shape: bf16[512,256], index: 3, kind: input, shape index: {}]   ;;  %s1665_s4 = inlined_call_operand.vmem [shape: f32[1,256], index: 4, kind: input, shape index: {}]   ;;  %s1666_s5 = inlined_call_operand.vmem [shape: f32[1,256], index: 5, kind: input, shape index: {}]   ;;  %s1667_s6 = inlined_call_operand.<no memory space> [shape: f32[1], index: 6, kind: input, shape index: {}]   ;;  %s1668_s7 = inlined_call_operand.hbm [shape: f32[1,2], index: 7, kind: output, shape index: {}]  }
   0x1   :  { %14 = vsyncpa [#allocation7], 0 }
   0x2   :  { %15 = vsyncpa [#allocation5], 0  ;;  %s1524_s24 = smov [#allocation3]   ;;  %s1452_s28 = scalar_lea.hbm %s1662_s1, 8192 }
   0x3   :  { %s23_s25 = sshll.u32 %s1524_s24, 4  ;;  %p1453_p0 = scmp.ne.s32.totalorder %s1662_s1, %s1452_s28  ;;  %s24_s25 = int_to_ptr.vmem [resolvable:$true] %s23_s25 }
   0x4   :  { %p1456_p1 = scmp.lt.u32.totalorder %s1452_s28, %s1662_s1 }
   0x6   :  { %p1458_p2 = pnand %p1456_p1, %p1453_p0 }
   0x8   :  { %1461 = shalt.err (!%p1458_p2)
}
   0x9   :  { %s1462_s10 = scalar_lea.vmem %s24_s25, 8192  ;;  %p1467_p4 = scmp.lt.s32.totalorder %s24_s25, %s24_s25 }
   0xa   :  { %p1463_p3 = scmp.ne.s32.totalorder %s24_s25, %s1462_s10  ;;  %p1468_p5 = scmp.lt.s32.totalorder %s1462_s10, %s1462_s10 }
   0xc   :  { %p1469_p6 = por %p1468_p5, %p1467_p4 }
   0xe   :  { %p1470_p7 = pnand %p1469_p6, %p1463_p3 }
  0x10   :  { %1473 = shalt.err (!%p1470_p7)
}
  0x11   :  { %s1525_s11 = smov 256   ;;  %s1526_s12 = smov 16  }
  0x12   :  { %29 = dma.hbm_to_vmem [thread:$0]  %s1662_s1, 8192, %s24_s25, [#allocation4], %s1525_s11, %s1525_s11, %s1526_s12  }
  0x13   :  { %s1527_s15 = smov [#allocation6]   ;;  %s1474_s19 = scalar_lea.hbm %s1664_s3, 8192 }
  0x14   :  { %s37_s16 = sshll.u32 %s1527_s15, 4  ;;  %p1475_p8 = scmp.ne.s32.totalorder %s1664_s3, %s1474_s19  ;;  %s38_s16 = int_to_ptr.vmem [resolvable:$true] %s37_s16 }
  0x15   :  { %p1478_p9 = scmp.lt.u32.totalorder %s1474_s19, %s1664_s3 }
  0x17   :  { %p1480_p10 = pnand %p1478_p9, %p1475_p8 }
  0x19   :  { %1483 = shalt.err (!%p1480_p10)
}
  0x1a   :  { %s1484_s24 = scalar_lea.vmem %s38_s16, 8192  ;;  %p1489_p12 = scmp.lt.s32.totalorder %s38_s16, %s38_s16 }
  0x1b   :  { %p1485_p11 = scmp.ne.s32.totalorder %s38_s16, %s1484_s24  ;;  %p1490_p13 = scmp.lt.s32.totalorder %s1484_s24, %s1484_s24 }
  0x1d   :  { %p1491_p0 = por %p1490_p13, %p1489_p12 }
  0x1f   :  { %p1492_p1 = pnand %p1491_p0, %p1485_p11 }
  0x21   :  { %1495 = shalt.err (!%p1492_p1)
}
  0x22   :  { %s1528_s1 = smov 128   ;;  %s1529_s25 = smov 8  }
  0x23   :  { %43 = dma.hbm_to_vmem [thread:$0]  %s1664_s3, 8192, %s38_s16, [#allocation7], %s1528_s1, %s1528_s1, %s1529_s25  }
  0x24   :  { %1518 = dma.done.wait [#allocation4], 8192  }
  0x25   :  { %1519 = vsyncadd [#allocation4], 4294959104 }
  0x26   :  { %1520 = dma.done.wait [#allocation7], 8192  }
  0x27   :  { %1521 = vsyncadd [#allocation7], 4294959104  ;;  %v1256_v0 = vld [vmem:[#allocation3 + $0x4] ss:$16 sps:$4 sm:$0xff]   ;;  %v1258_v1 = vld [vmem:[#allocation3] ss:$16 sps:$4 sm:$0xff]  }
  0x28   :  { %476 = vmatprep.subr.bf16.mxu1 %v1256_v0  ;;  %v1259_v2 = vld [vmem:[#allocation3 + $0x24] ss:$16 sps:$4 sm:$0xff]   ;;  %v1261_v3 = vld [vmem:[#allocation3 + $0x20] ss:$16 sps:$4 sm:$0xff]   ;;  %v1306_v45 = vld [vmem:[#allocation3 + $0xc] ss:$16 sps:$4 sm:$0xff]  }
  0x29   :  { %477 = vmatpush1.bf16.msra.mxu1 %v1258_v1  ;;  %v1262_v4 = vld [vmem:[#allocation3 + $0x44] ss:$16 sps:$4 sm:$0xff]   ;;  %v1264_v5 = vld [vmem:[#allocation3 + $0x40] ss:$16 sps:$4 sm:$0xff]   ;;  %v1304_v47 = vld [vmem:[#allocation3 + $0x8] ss:$16 sps:$4 sm:$0xff]  }
  0x2a   :  { %478 = vmatprep.subr.bf16.mxu1 %v1259_v2  ;;  %v1265_v6 = vld [vmem:[#allocation3 + $0x64] ss:$16 sps:$4 sm:$0xff]   ;;  %v1267_v7 = vld [vmem:[#allocation3 + $0x60] ss:$16 sps:$4 sm:$0xff]   ;;  %v1309_v49 = vld [vmem:[#allocation3 + $0x2c] ss:$16 sps:$4 sm:$0xff]  }
  0x2b   :  { %v1268_v8 = vld [vmem:[#allocation3 + $0x84] ss:$16 sps:$4 sm:$0xff]   ;;  %v1270_v9 = vld [vmem:[#allocation3 + $0x80] ss:$16 sps:$4 sm:$0xff]   ;;  %v1307_v52 = vld [vmem:[#allocation3 + $0x28] ss:$16 sps:$4 sm:$0xff]  }
  0x2c   :  { %v1271_v10 = vld [vmem:[#allocation3 + $0xa4] ss:$16 sps:$4 sm:$0xff]   ;;  %v1273_v11 = vld [vmem:[#allocation3 + $0xa0] ss:$16 sps:$4 sm:$0xff]   ;;  %v1312_v53 = vld [vmem:[#allocation3 + $0x4c] ss:$16 sps:$4 sm:$0xff]  }
  0x2d   :  { %479 = vmatpush1.bf16.msra.mxu1 %v1261_v3  ;;  %v1274_v12 = vld [vmem:[#allocation3 + $0xc4] ss:$16 sps:$4 sm:$0xff]   ;;  %v1598_v13 = vld.sshfl [vmem:[%s1661_s0] sm:$0x33 pattern:$0x76325410] }
  0x2e   :  { %480 = vmatprep.subr.bf16.mxu1 %v1262_v4  ;;  %v65_v14 = vcombine.high %v1598_v13, %v1598_v13  ;;  %v1276_v15 = vld [vmem:[#allocation3 + $0xc0] ss:$16 sps:$4 sm:$0xff]   ;;  %v1277_v16 = vld [vmem:[#allocation3 + $0xe4] ss:$16 sps:$4 sm:$0xff]   ;;  %v1607_v48 = vpack.c.bf16 %v1598_v13, %v1598_v13  ;;  %v1310_v56 = vld [vmem:[#allocation3 + $0x48] ss:$16 sps:$4 sm:$0xff]  }
  0x2f   :  { %v1279_v18 = vld [vmem:[#allocation3 + $0xe0] ss:$16 sps:$4 sm:$0xff]   ;;  %v1280_v19 = vld [vmem:[#allocation3 + $0x104] ss:$16 sps:$4 sm:$0xff]   ;;  %v1315_v57 = vld [vmem:[#allocation3 + $0x6c] ss:$16 sps:$4 sm:$0xff]  }
  0x30   :  { %v1602_v17 = vpack.c.bf16 %v65_v14, %v65_v14  ;;  %v1282_v20 = vld [vmem:[#allocation3 + $0x100] ss:$16 sps:$4 sm:$0xff]   ;;  %v1283_v21 = vld [vmem:[#allocation3 + $0x124] ss:$16 sps:$4 sm:$0xff]   ;;  %v1313_v60 = vld [vmem:[#allocation3 + $0x68] ss:$16 sps:$4 sm:$0xff]  }
  0x31   :  { %481 = vmatpush1.bf16.msra.mxu1 %v1264_v5  ;;  %v1285_v22 = vld [vmem:[#allocation3 + $0x120] ss:$16 sps:$4 sm:$0xff]   ;;  %v1286_v23 = vld [vmem:[#allocation3 + $0x144] ss:$16 sps:$4 sm:$0xff]   ;;  %v1318_v61 = vld [vmem:[#allocation3 + $0x8c] ss:$16 sps:$4 sm:$0xff]  }
  0x32   :  { %482 = vmatprep.subr.bf16.mxu1 %v1265_v6  ;;  %508 = vmatprep.mubr.bf16.mxu1 %v1602_v17  ;;  %v1288_v24 = vld [vmem:[#allocation3 + $0x140] ss:$16 sps:$4 sm:$0xff]   ;;  %v1289_v25 = vld [vmem:[#allocation3 + $0x164] ss:$16 sps:$4 sm:$0xff]   ;;  %v1316_v0 = vld [vmem:[#allocation3 + $0x88] ss:$16 sps:$4 sm:$0xff]  }
  0x33   :  { %v1291_v26 = vld [vmem:[#allocation3 + $0x160] ss:$16 sps:$4 sm:$0xff]   ;;  %v1292_v27 = vld [vmem:[#allocation3 + $0x184] ss:$16 sps:$4 sm:$0xff]   ;;  %v1321_v1 = vld [vmem:[#allocation3 + $0xac] ss:$16 sps:$4 sm:$0xff]  }
  0x34   :  { %v1352_v28 = vld [vmem:[#allocation6 + $0x4] ss:$8 sps:$4 sm:$0xff]   ;;  %v1354_v29 = vld [vmem:[#allocation6] ss:$8 sps:$4 sm:$0xff]   ;;  %v1355_v30 = vld [vmem:[#allocation6 + $0x14] ss:$8 sps:$4 sm:$0xff]  }
  0x35   :  { %483 = vmatpush1.bf16.msra.mxu1 %v1267_v7  ;;  %v1294_v31 = vld [vmem:[#allocation3 + $0x180] ss:$16 sps:$4 sm:$0xff]   ;;  %970 = vmatprep.subr.bf16.mxu0 %v1352_v28  ;;  %v1295_v33 = vld [vmem:[#allocation3 + $0x1a4] ss:$16 sps:$4 sm:$0xff]   ;;  %v1319_v4 = vld [vmem:[#allocation3 + $0xa8] ss:$16 sps:$4 sm:$0xff]  }
  0x36   :  { %484 = vmatprep.subr.bf16.mxu1 %v1268_v8  ;;  %971 = vmatpush1.bf16.msra.mxu0 %v1354_v29  ;;  %v1357_v32 = vld [vmem:[#allocation6 + $0x10] ss:$8 sps:$4 sm:$0xff]   ;;  %v1358_v34 = vld [vmem:[#allocation6 + $0x24] ss:$8 sps:$4 sm:$0xff]   ;;  %v1360_v36 = vld [vmem:[#allocation6 + $0x20] ss:$8 sps:$4 sm:$0xff]  }
  0x37   :  { %972 = vmatprep.subr.bf16.mxu0 %v1355_v30  ;;  %v1297_v35 = vld [vmem:[#allocation3 + $0x1a0] ss:$16 sps:$4 sm:$0xff]   ;;  %v1298_v37 = vld [vmem:[#allocation3 + $0x1c4] ss:$16 sps:$4 sm:$0xff]   ;;  %v1324_v5 = vld [vmem:[#allocation3 + $0xcc] ss:$16 sps:$4 sm:$0xff]  }
  0x38   :  { %v1361_v38 = vld [vmem:[#allocation6 + $0x34] ss:$8 sps:$4 sm:$0xff]   ;;  %v1300_v39 = vld [vmem:[#allocation3 + $0x1c0] ss:$16 sps:$4 sm:$0xff]   ;;  %v1364_v42 = vld [vmem:[#allocation6 + $0x44] ss:$8 sps:$4 sm:$0xff]  }
  0x39   :  { %485 = vmatpush1.bf16.msra.mxu1 %v1270_v9  ;;  %v1363_v40 = vld [vmem:[#allocation6 + $0x30] ss:$8 sps:$4 sm:$0xff]   ;;  %v1301_v41 = vld [vmem:[#allocation3 + $0x1e4] ss:$16 sps:$4 sm:$0xff]   ;;  %v1366_v44 = vld [vmem:[#allocation6 + $0x40] ss:$8 sps:$4 sm:$0xff]  }
  0x3a   :  { %486 = vmatprep.subr.bf16.mxu1 %v1271_v10  ;;  %973 = vmatpush1.bf16.msra.mxu0 %v1357_v32  ;;  %v1303_v43 = vld [vmem:[#allocation3 + $0x1e0] ss:$16 sps:$4 sm:$0xff]   ;;  %v1367_v46 = vld [vmem:[#allocation6 + $0x54] ss:$8 sps:$4 sm:$0xff]   ;;  %v1370_v51 = vld [vmem:[#allocation6 + $0x64] ss:$8 sps:$4 sm:$0xff]  }
  0x3b   :  { %974 = vmatprep.subr.bf16.mxu0 %v1358_v34  ;;  %v1369_v50 = vld [vmem:[#allocation6 + $0x50] ss:$8 sps:$4 sm:$0xff]   ;;  %v1372_v54 = vld [vmem:[#allocation6 + $0x60] ss:$8 sps:$4 sm:$0xff]   ;;  %v1373_v55 = vld [vmem:[#allocation6 + $0x74] ss:$8 sps:$4 sm:$0xff]  }
  0x3c   :  { %v1375_v58 = vld [vmem:[#allocation6 + $0x70] ss:$8 sps:$4 sm:$0xff]   ;;  %v1376_v59 = vld [vmem:[#allocation6 + $0x84] ss:$8 sps:$4 sm:$0xff]   ;;  %v1378_v62 = vld [vmem:[#allocation6 + $0x80] ss:$8 sps:$4 sm:$0xff]  }
  0x3d   :  { %487 = vmatpush1.bf16.msra.mxu1 %v1273_v11  ;;  %v1379_v63 = vld [vmem:[#allocation6 + $0x94] ss:$8 sps:$4 sm:$0xff]   ;;  %v1381_v2 = vld [vmem:[#allocation6 + $0x90] ss:$8 sps:$4 sm:$0xff]   ;;  %v1382_v3 = vld [vmem:[#allocation6 + $0xa4] ss:$8 sps:$4 sm:$0xff]  }
  0x3e   :  { %488 = vmatprep.subr.bf16.mxu1 %v1274_v12  ;;  %975 = vmatpush1.bf16.msra.mxu0 %v1360_v36  ;;  %v1384_v6 = vld [vmem:[#allocation6 + $0xa0] ss:$8 sps:$4 sm:$0xff]   ;;  %v1385_v7 = vld [vmem:[#allocation6 + $0xb4] ss:$8 sps:$4 sm:$0xff]   ;;  %v1387_v10 = vld [vmem:[#allocation6 + $0xb0] ss:$8 sps:$4 sm:$0xff]  }
  0x3f   :  { %976 = vmatprep.subr.bf16.mxu0 %v1361_v38  ;;  %v1322_v8 = vld [vmem:[#allocation3 + $0xc8] ss:$16 sps:$4 sm:$0xff]   ;;  %v1327_v9 = vld [vmem:[#allocation3 + $0xec] ss:$16 sps:$4 sm:$0xff]   ;;  %vm1072_vm6 = vcmask 1041408   ;;  %s1530_s10 = smov [#allocation8]  }
  0x40   :  { %v1388_v11 = vld [vmem:[#allocation6 + $0xc4] ss:$8 sps:$4 sm:$0xff]   ;;  %v1325_v12 = vld [vmem:[#allocation3 + $0xe8] ss:$16 sps:$4 sm:$0xff]   ;;  %v1397_v34 = vld [vmem:[#allocation6 + $0xf4] ss:$8 sps:$4 sm:$0xff]  }
  0x41   :  { %489 = vmatpush1.bf16.msra.mxu1 %v1276_v15  ;;  %v1330_v13 = vld [vmem:[#allocation3 + $0x10c] ss:$16 sps:$4 sm:$0xff]   ;;  %v1390_v14 = vld [vmem:[#allocation6 + $0xc0] ss:$8 sps:$4 sm:$0xff]   ;;  %s1104_s11 = sshll.u32 %s1530_s10, 4  ;;  %vm1096_vm7 = vcmask 8192   ;;  %s1105_s11 = int_to_ptr.vmem [resolvable:$true] %s1104_s11 }
  0x42   :  { %490 = vmatprep.subr.bf16.mxu1 %v1277_v16  ;;  %977 = vmatpush1.bf16.msra.mxu0 %v1363_v40  ;;  %v1391_v15 = vld [vmem:[#allocation6 + $0xd4] ss:$8 sps:$4 sm:$0xff]   ;;  %v1328_v16 = vld [vmem:[#allocation3 + $0x108] ss:$16 sps:$4 sm:$0xff]   ;;  %v1394_v32 = vld [vmem:[#allocation6 + $0xe4] ss:$8 sps:$4 sm:$0xff]   ;;  %p1501_p3 = scmp.lt.s32.totalorder %s1105_s11, %s1105_s11 }
  0x43   :  { %978 = vmatprep.subr.bf16.mxu0 %v1364_v42  ;;  %v1348_v28 = vld [vmem:[#allocation3 + $0x1cc] ss:$16 sps:$4 sm:$0xff]   ;;  %v1346_v29 = vld [vmem:[#allocation3 + $0x1c8] ss:$16 sps:$4 sm:$0xff]   ;;  %v1621_v40 = vld [vmem:[%s1663_s2] sm:$0xf] }
  0x44   :  { %v1351_v30 = vld [vmem:[#allocation3 + $0x1ec] ss:$16 sps:$4 sm:$0xff]   ;;  %s1500_s12 = scalar_lea.vmem %s1105_s11, 32 }
  0x45   :  { %491 = vmatpush1.bf16.msra.mxu1 %v1279_v18  ;;  %v1393_v18 = vld [vmem:[#allocation6 + $0xd0] ss:$8 sps:$4 sm:$0xff]   ;;  %v1402_v36 = vld [vmem:[#allocation6 + $0x104] ss:$8 sps:$4 sm:$0xff]  }
  0x46   :  { %492 = vmatprep.subr.bf16.mxu1 %v1280_v19  ;;  %979 = vmatpush1.bf16.msra.mxu0 %v1366_v44  ;;  %v1331_v19 = vld [vmem:[#allocation3 + $0x128] ss:$16 sps:$4 sm:$0xff]  }
  0x47   :  { %980 = vmatprep.subr.bf16.mxu0 %v1367_v46 }
  0x49   :  { %493 = vmatpush1.bf16.msra.mxu1 %v1282_v20  ;;  %v1336_v20 = vld [vmem:[#allocation3 + $0x14c] ss:$16 sps:$4 sm:$0xff]  }
  0x4a   :  { %494 = vmatprep.subr.bf16.mxu1 %v1283_v21  ;;  %981 = vmatpush1.bf16.msra.mxu0 %v1369_v50  ;;  %v1334_v21 = vld [vmem:[#allocation3 + $0x148] ss:$16 sps:$4 sm:$0xff]  }
  0x4b   :  { %982 = vmatprep.subr.bf16.mxu0 %v1370_v51 }
  0x4d   :  { %495 = vmatpush1.bf16.msra.mxu1 %v1285_v22  ;;  %v1339_v22 = vld [vmem:[#allocation3 + $0x16c] ss:$16 sps:$4 sm:$0xff]  }
  0x4e   :  { %496 = vmatprep.subr.bf16.mxu1 %v1286_v23  ;;  %983 = vmatpush1.bf16.msra.mxu0 %v1372_v54  ;;  %v1337_v23 = vld [vmem:[#allocation3 + $0x168] ss:$16 sps:$4 sm:$0xff]  }
  0x4f   :  { %984 = vmatprep.subr.bf16.mxu0 %v1373_v55  ;;  %v1400_v55 = vld [vmem:[#allocation6 + $0x100] ss:$8 sps:$4 sm:$0xff]  }
  0x51   :  { %497 = vmatpush1.bf16.msra.mxu1 %v1288_v24  ;;  %v1342_v24 = vld [vmem:[#allocation3 + $0x18c] ss:$16 sps:$4 sm:$0xff]  }
  0x52   :  { %498 = vmatprep.subr.bf16.mxu1 %v1289_v25  ;;  %985 = vmatpush1.bf16.msra.mxu0 %v1375_v58  ;;  %v1340_v25 = vld [vmem:[#allocation3 + $0x188] ss:$16 sps:$4 sm:$0xff]  }
  0x53   :  { %986 = vmatprep.subr.bf16.mxu0 %v1376_v59  ;;  %v1403_v58 = vld [vmem:[#allocation6 + $0x110] ss:$8 sps:$4 sm:$0xff]   ;;  %v1408_v59 = vld [vmem:[#allocation6 + $0x124] ss:$8 sps:$4 sm:$0xff]  }
  0x55   :  { %499 = vmatpush1.bf16.msra.mxu1 %v1291_v26  ;;  %v1345_v26 = vld [vmem:[#allocation3 + $0x1ac] ss:$16 sps:$4 sm:$0xff]  }
  0x56   :  { %500 = vmatprep.subr.bf16.mxu1 %v1292_v27  ;;  %987 = vmatpush1.bf16.msra.mxu0 %v1378_v62  ;;  %v1343_v27 = vld [vmem:[#allocation3 + $0x1a8] ss:$16 sps:$4 sm:$0xff]  }
  0x57   :  { %988 = vmatprep.subr.bf16.mxu0 %v1379_v63  ;;  %v1409_v62 = vld [vmem:[#allocation6 + $0x130] ss:$8 sps:$4 sm:$0xff]   ;;  %v1414_v63 = vld [vmem:[#allocation6 + $0x144] ss:$8 sps:$4 sm:$0xff]  }
  0x59   :  { %501 = vmatpush1.bf16.msra.mxu1 %v1294_v31  ;;  %v1349_v31 = vld [vmem:[#allocation3 + $0x1e8] ss:$16 sps:$4 sm:$0xff]  }
  0x5a   :  { %502 = vmatprep.subr.bf16.mxu1 %v1295_v33  ;;  %989 = vmatpush1.bf16.msra.mxu0 %v1381_v2  ;;  %v1396_v33 = vld [vmem:[#allocation6 + $0xe0] ss:$8 sps:$4 sm:$0xff]   ;;  %v1415_v2 = vld [vmem:[#allocation6 + $0x150] ss:$8 sps:$4 sm:$0xff]  }
  0x5b   :  { %990 = vmatprep.subr.bf16.mxu0 %v1382_v3  ;;  %v1420_v3 = vld [vmem:[#allocation6 + $0x164] ss:$8 sps:$4 sm:$0xff]  }
  0x5d   :  { %503 = vmatpush1.bf16.msra.mxu1 %v1297_v35  ;;  %v1399_v35 = vld [vmem:[#allocation6 + $0xf0] ss:$8 sps:$4 sm:$0xff]  }
  0x5e   :  { %504 = vmatprep.subr.bf16.mxu1 %v1298_v37  ;;  %991 = vmatpush1.bf16.msra.mxu0 %v1384_v6  ;;  %v136_v37 = vlaneseq  ;;  %v1421_v6 = vld [vmem:[#allocation6 + $0x170] ss:$8 sps:$4 sm:$0xff]  }
  0x5f   :  { %992 = vmatprep.subr.bf16.mxu0 %v1385_v7  ;;  %v1426_v7 = vld [vmem:[#allocation6 + $0x184] ss:$8 sps:$4 sm:$0xff]  }
  0x60   :  { %v1613_v38 = vshrl.u32 %v136_v37, 7 }
  0x61   :  { %505 = vmatpush1.bf16.msra.mxu1 %v1300_v39 }
  0x62   :  { %506 = vmatprep.subr.bf16.mxu1 %v1301_v41  ;;  %993 = vmatpush1.bf16.msra.mxu0 %v1387_v10  ;;  %v1616_v39 = vsub.s32 0, %v1613_v38  ;;  %v1624_v41 = vsub.s32 1, %v1613_v38  ;;  %v1427_v10 = vld [vmem:[#allocation6 + $0x190] ss:$8 sps:$4 sm:$0xff]  }
  0x63   :  { %994 = vmatprep.subr.bf16.mxu0 %v1388_v11  ;;  %v1432_v11 = vld [vmem:[#allocation6 + $0x1a4] ss:$8 sps:$4 sm:$0xff]  }
  0x64   :  { %v139_v42 = vrot.slane %v1621_v40, %v1616_v39 }
  0x65   :  { %507 = vmatpush1.bf16.msra.mxu1 %v1303_v43  ;;  %v143_v43 = vrot.slane %v1621_v40, %v1624_v41 }
  0x66   :  { %517 = vmatprep.subr.bf16.mxu1 %v1306_v45  ;;  %995 = vmatpush1.bf16.msra.mxu0 %v1390_v14  ;;  %v1433_v14 = vld [vmem:[#allocation6 + $0x1b0] ss:$8 sps:$4 sm:$0xff]  }
  0x67   :  { %996 = vmatprep.subr.bf16.mxu0 %v1391_v15  ;;  %v1438_v15 = vld [vmem:[#allocation6 + $0x1c4] ss:$8 sps:$4 sm:$0xff]  }
  0x68   :  { %509 = vmatmul.mubr.bf16.vlgmr.msra.gmra.mrb[0].mxu1 %v1607_v48 }
  0x69   :  { %518 = vmatpush1.bf16.msra.mxu1 %v1304_v47  ;;  %549 = vmatprep.mubr.bf16.mxu1 %v1602_v17  ;;  %v1333_v17 = vld [vmem:[#allocation3 + $0x12c] ss:$16 sps:$4 sm:$0xff]  }
  0x6a   :  { %519 = vmatprep.subr.bf16.mxu1 %v1309_v49  ;;  %997 = vmatpush1.bf16.msra.mxu0 %v1393_v18  ;;  %v146_v18 = vsub.s32 2, %v1613_v38 }
  0x6b   :  { %998 = vmatprep.subr.bf16.mxu0 %v1394_v32 }
  0x6d   :  { %520 = vmatpush1.bf16.msra.mxu1 %v1307_v52 }
  0x6e   :  { %521 = vmatprep.subr.bf16.mxu1 %v1312_v53  ;;  %999 = vmatpush1.bf16.msra.mxu0 %v1396_v33  ;;  %v1445_v33 = vld [vmem:[#allocation6 + $0x1f0] ss:$8 sps:$4 sm:$0xff]  }
  0x6f   :  { %1000 = vmatprep.subr.bf16.mxu0 %v1397_v34 }
  0x71   :  { %522 = vmatpush1.bf16.msra.mxu1 %v1310_v56 }
  0x72   :  { %523 = vmatprep.subr.bf16.mxu1 %v1315_v57  ;;  %1001 = vmatpush1.bf16.msra.mxu0 %v1399_v35  ;;  %v1405_v57 = vld [vmem:[#allocation6 + $0x114] ss:$8 sps:$4 sm:$0xff]  }
  0x73   :  { %1011 = vmatprep.subr.bf16.mxu0 %v1402_v36 }
  0x75   :  { %524 = vmatpush1.bf16.msra.mxu1 %v1313_v60  ;;  %v1406_v60 = vld [vmem:[#allocation6 + $0x120] ss:$8 sps:$4 sm:$0xff]  }
  0x76   :  { %525 = vmatprep.subr.bf16.mxu1 %v1318_v61  ;;  %v1411_v61 = vld [vmem:[#allocation6 + $0x134] ss:$8 sps:$4 sm:$0xff]  }
  0x79   :  { %526 = vmatpush1.bf16.msra.mxu1 %v1316_v0  ;;  %v1412_v0 = vld [vmem:[#allocation6 + $0x140] ss:$8 sps:$4 sm:$0xff]  }
  0x7a   :  { %527 = vmatprep.subr.bf16.mxu1 %v1321_v1  ;;  %v1417_v1 = vld [vmem:[#allocation6 + $0x154] ss:$8 sps:$4 sm:$0xff]  }
  0x7d   :  { %528 = vmatpush1.bf16.msra.mxu1 %v1319_v4  ;;  %v1418_v4 = vld [vmem:[#allocation6 + $0x160] ss:$8 sps:$4 sm:$0xff]  }
  0x7e   :  { %529 = vmatprep.subr.bf16.mxu1 %v1324_v5  ;;  %v1423_v5 = vld [vmem:[#allocation6 + $0x174] ss:$8 sps:$4 sm:$0xff]  }
  0x81   :  { %530 = vmatpush1.bf16.msra.mxu1 %v1322_v8  ;;  %v1424_v8 = vld [vmem:[#allocation6 + $0x180] ss:$8 sps:$4 sm:$0xff]  }
  0x82   :  { %531 = vmatprep.subr.bf16.mxu1 %v1327_v9  ;;  %v1429_v9 = vld [vmem:[#allocation6 + $0x194] ss:$8 sps:$4 sm:$0xff]  }
  0x85   :  { %532 = vmatpush1.bf16.msra.mxu1 %v1325_v12  ;;  %v1430_v12 = vld [vmem:[#allocation6 + $0x1a0] ss:$8 sps:$4 sm:$0xff]  }
  0x86   :  { %533 = vmatprep.subr.bf16.mxu1 %v1330_v13  ;;  %v1435_v13 = vld [vmem:[#allocation6 + $0x1b4] ss:$8 sps:$4 sm:$0xff]  }
  0x89   :  { %534 = vmatpush1.bf16.msra.mxu1 %v1328_v16  ;;  %v1436_v16 = vld [vmem:[#allocation6 + $0x1c0] ss:$8 sps:$4 sm:$0xff]  }
  0x8a   :  { %535 = vmatprep.subr.bf16.mxu1 %v1333_v17  ;;  %v1441_v17 = vld [vmem:[#allocation6 + $0x1d4] ss:$8 sps:$4 sm:$0xff]  }
  0x8d   :  { %536 = vmatpush1.bf16.msra.mxu1 %v1331_v19  ;;  %v150_v19 = vsub.s32 3, %v1613_v38 }
  0x8e   :  { %537 = vmatprep.subr.bf16.mxu1 %v1336_v20  ;;  %v1439_v20 = vld [vmem:[#allocation6 + $0x1d0] ss:$8 sps:$4 sm:$0xff]  }
  0x91   :  { %538 = vmatpush1.bf16.msra.mxu1 %v1334_v21  ;;  %v1444_v21 = vld [vmem:[#allocation6 + $0x1e4] ss:$8 sps:$4 sm:$0xff]  }
  0x92   :  { %539 = vmatprep.subr.bf16.mxu1 %v1339_v22  ;;  %v147_v22 = vrot.slane %v1621_v40, %v146_v18 }
  0x95   :  { %540 = vmatpush1.bf16.msra.mxu1 %v1337_v23  ;;  %v151_v23 = vrot.slane %v1621_v40, %v150_v19 }
  0x96   :  { %541 = vmatprep.subr.bf16.mxu1 %v1342_v24  ;;  %v1442_v24 = vld [vmem:[#allocation6 + $0x1e0] ss:$8 sps:$4 sm:$0xff]  }
  0x99   :  { %542 = vmatpush1.bf16.msra.mxu1 %v1340_v25 }
  0x9a   :  { %543 = vmatprep.subr.bf16.mxu1 %v1345_v26  ;;  %v1447_v26 = vld [vmem:[#allocation6 + $0x1f4] ss:$8 sps:$4 sm:$0xff]  }
  0x9d   :  { %544 = vmatpush1.bf16.msra.mxu1 %v1343_v27 }
  0x9e   :  { %545 = vmatprep.subr.bf16.mxu1 %v1348_v28 }
  0xa1   :  { %546 = vmatpush1.bf16.msra.mxu1 %v1346_v29 }
  0xa2   :  { %547 = vmatprep.subr.bf16.mxu1 %v1351_v30 }
  0xa5   :  { %548 = vmatpush1.bf16.msra.mxu1 %v1349_v31 }
  0xa8   :  { %550 = vmatmul.mubr.bf16.vlgmr.msra.gmra.mrb[4].mxu1 %v1607_v48 }
 0x13b   :  { %v510_v44 = vpop.f32.mrb[0].mxu1 }
 0x13c   :  { %v511_v45 = vadd.f32 %v510_v44, %v139_v42  ;;  %v512_v46 = vpop.f32.mrb[1].mxu1 }
 0x13d   :  { %v513_v47 = vadd.f32 %v512_v46, %v143_v43  ;;  %v514_v48 = vpop.f32.mrb[2].mxu1  ;;  %v638_v43 = vld [vmem:[%s1665_s4] sm:$0x3] }
 0x13e   :  { %vm558_vm0 = vcmp.gt.f32.partialorder %v511_v45, 0.0  ;;  %v562_v49 = vmul.f32 0.2, %v511_v45  ;;  %v515_v50 = vpop.f32.mrb[3].mxu1  ;;  %v643_v44 = vrot.slane %v638_v43, %v1616_v39  ;;  %v1058_v46 = vld [vmem:[%s1666_s5] sm:$0x3] }
 0x13f   :  { %vm559_vm1 = vcmp.gt.f32.partialorder %v513_v47, 0.0  ;;  %v563_v51 = vmul.f32 0.2, %v513_v47 }
 0x140   :  { %v566_v52 = vsel %vm558_vm0, %v511_v45, %v562_v49  ;;  %v647_v45 = vrot.slane %v638_v43, %v1624_v41 }
 0x141   :  { %v567_v53 = vsel %vm559_vm1, %v513_v47, %v563_v51  ;;  %v570_v56 = vpack.c.bf16 %v566_v52, %v566_v52  ;;  %v1063_v52 = vrot.slane %v1058_v46, %v1616_v39  ;;  %v1079_v39 = vstv %s1667_s6  ;;  %s1496_s6 = scalar_lea.vmem %s1105_s11, 16 }
 0x142   :  { %v571_v54 = vpack.c.bf16 %v567_v53, %v567_v53  ;;  %p1497_p2 = scmp.ne.s32.totalorder %s1105_s11, %s1496_s6  ;;  %p1502_p4 = scmp.lt.s32.totalorder %s1500_s12, %s1496_s6 }
 0x144   :  { %1002 = vmatprep.mubr.bf16.mxu0 %v571_v54  ;;  %p1503_p5 = por %p1502_p4, %p1501_p3 }
 0x145   :  { %1003 = vmatmul.mubr.bf16.vlgmr.msra.gmra.mrb[0].mxu0 %v570_v56 }
 0x146   :  { %1012 = vmatpush1.bf16.msra.mxu0 %v1400_v55  ;;  %v1067_v55 = vrot.slane %v1058_v46, %v1624_v41  ;;  %p1504_p6 = pnand %p1503_p5, %p1497_p2 }
 0x147   :  { %1013 = vmatprep.subr.bf16.mxu0 %v1405_v57 }
 0x14a   :  { %1014 = vmatpush1.bf16.msra.mxu0 %v1403_v58 }
 0x14b   :  { %1015 = vmatprep.subr.bf16.mxu0 %v1408_v59 }
 0x14e   :  { %1016 = vmatpush1.bf16.msra.mxu0 %v1406_v60 }
 0x14f   :  { %1017 = vmatprep.subr.bf16.mxu0 %v1411_v61 }
 0x152   :  { %1018 = vmatpush1.bf16.msra.mxu0 %v1409_v62 }
 0x153   :  { %1019 = vmatprep.subr.bf16.mxu0 %v1414_v63 }
 0x156   :  { %1020 = vmatpush1.bf16.msra.mxu0 %v1412_v0 }
 0x157   :  { %1021 = vmatprep.subr.bf16.mxu0 %v1417_v1 }
 0x15a   :  { %1022 = vmatpush1.bf16.msra.mxu0 %v1415_v2 }
 0x15b   :  { %1023 = vmatprep.subr.bf16.mxu0 %v1420_v3 }
 0x15e   :  { %1024 = vmatpush1.bf16.msra.mxu0 %v1418_v4 }
 0x15f   :  { %1025 = vmatprep.subr.bf16.mxu0 %v1423_v5  ;;  %v1090_v5 = vand.u32 127, %v136_v37 }
 0x162   :  { %1026 = vmatpush1.bf16.msra.mxu0 %v1421_v6 }
 0x163   :  { %1027 = vmatprep.subr.bf16.mxu0 %v1426_v7 }
 0x166   :  { %1028 = vmatpush1.bf16.msra.mxu0 %v1424_v8  ;;  %v1093_v8 = vsub.s32 %v1090_v5, %v1613_v38 }
 0x167   :  { %1029 = vmatprep.subr.bf16.mxu0 %v1429_v9 }
 0x16a   :  { %1030 = vmatpush1.bf16.msra.mxu0 %v1427_v10 }
 0x16b   :  { %1031 = vmatprep.subr.bf16.mxu0 %v1432_v11 }
 0x16e   :  { %1032 = vmatpush1.bf16.msra.mxu0 %v1430_v12 }
 0x16f   :  { %1033 = vmatprep.subr.bf16.mxu0 %v1435_v13 }
 0x172   :  { %1034 = vmatpush1.bf16.msra.mxu0 %v1433_v14 }
 0x173   :  { %1035 = vmatprep.subr.bf16.mxu0 %v1438_v15 }
 0x176   :  { %1036 = vmatpush1.bf16.msra.mxu0 %v1436_v16 }
 0x177   :  { %1037 = vmatprep.subr.bf16.mxu0 %v1441_v17 }
 0x17a   :  { %1038 = vmatpush1.bf16.msra.mxu0 %v1439_v20 }
 0x17b   :  { %v551_v25 = vpop.f32.mrb[4].mxu1  ;;  %1039 = vmatprep.subr.bf16.mxu0 %v1444_v21 }
 0x17c   :  { %v552_v27 = vadd.f32 %v551_v25, %v147_v22  ;;  %v553_v28 = vpop.f32.mrb[5].mxu1 }
 0x17d   :  { %v554_v29 = vadd.f32 %v553_v28, %v151_v23  ;;  %v555_v30 = vpop.f32.mrb[6].mxu1 }
 0x17e   :  { %vm560_vm2 = vcmp.gt.f32.partialorder %v552_v27, 0.0  ;;  %v564_v31 = vmul.f32 0.2, %v552_v27  ;;  %v556_v32 = vpop.f32.mrb[7].mxu1  ;;  %1040 = vmatpush1.bf16.msra.mxu0 %v1442_v24 }
 0x17f   :  { %vm561_vm3 = vcmp.gt.f32.partialorder %v554_v29, 0.0  ;;  %v565_v34 = vmul.f32 0.2, %v554_v29  ;;  %1041 = vmatprep.subr.bf16.mxu0 %v1447_v26 }
 0x180   :  { %v568_v35 = vsel %vm560_vm2, %v552_v27, %v564_v31 }
 0x181   :  { %v569_v36 = vsel %vm561_vm3, %v554_v29, %v565_v34  ;;  %v572_v42 = vpack.c.bf16 %v568_v35, %v568_v35 }
 0x182   :  { %1042 = vmatpush1.bf16.msra.mxu0 %v1445_v33  ;;  %v573_v40 = vpack.c.bf16 %v569_v36, %v569_v36 }
 0x184   :  { %1043 = vmatprep.mubr.bf16.mxu0 %v573_v40 }
 0x185   :  { %1044 = vmatmul.mubr.bf16.vlgmr.msra.gmra.mrb[0].mxu0 %v572_v42 }
 0x258   :  { %v1045_v47 = vpop.f32.mrb[0].mxu0 }
 0x259   :  { %v1243_v48 = vadd.f32 %v1045_v47, %v643_v44  ;;  %v1047_v49 = vpop.f32.mrb[1].mxu0 }
 0x25a   :  { %v1244_v50 = vadd.f32 %v1047_v49, %v647_v45  ;;  %v1049_v51 = vpop.f32.mrb[2].mxu0 }
 0x25b   :  { %vm1052_vm4 = vcmp.gt.f32.partialorder %v1243_v48, 0.0  ;;  %v1054_v53 = vmul.f32 0.2, %v1243_v48  ;;  %v1050_v54 = vpop.f32.mrb[3].mxu0 }
 0x25c   :  { %vm1053_vm5 = vcmp.gt.f32.partialorder %v1244_v50, 0.0  ;;  %v1055_v56 = vmul.f32 0.2, %v1244_v50 }
 0x25d   :  { %v1056_v57 = vsel %vm1052_vm4, %v1243_v48, %v1054_v53 }
 0x25e   :  { %v1057_v58 = vsel %vm1053_vm5, %v1244_v50, %v1055_v56  ;;  %v1070_v59 = vmul.f32 %v1063_v52, %v1056_v57 }
 0x25f   :  { %v1071_v60 = vmul.f32 %v1067_v55, %v1057_v58 }
 0x260   :  { %v1073_v61 = vsel %vm1072_vm6, %v1070_v59, 0.0 }
 0x261   :  { %v1074_v62 = vsel %vm1072_vm6, %v1071_v60, 0.0 }
 0x262   :  { %v1075_v63 = vadd.f32 %v1074_v62, %v1073_v61 }
 0x264   :  { %1076 = vadd.xlane.f32.xlu0 %v1075_v63 }
 0x2f1   :  { %v1077_v0 = vpop.xlane.xlu0 %1076 }
 0x2f2   :  { %v1080_v1 = vadd.f32 %v1079_v39, %v1077_v0 }
 0x2f4   :  { %v1081_v2 = vsub.f32 0.0, %v1080_v1 }
 0x2f6   :  { %v1082_v3 = vmul.f32 1.442695, %v1081_v2 }
 0x2f8   :  { %1448 = vpow2.f32 %v1082_v3 }
 0x302   :  { %v1449_v41 = vpop.eup %1448 }
 0x303   :  { %v1084_v4 = vadd.f32 1.0, %v1449_v41 }
 0x305   :  { %1450 = vrcp.f32 %v1084_v4 }
 0x30f   :  { %v1451_v6 = vpop.eup %1450 }
 0x310   :  { %v1086_v7 = vmax.f32 %v1451_v6, 0.0 }
 0x312   :  { %v1087_v9 = vmin.f32 %v1086_v7, 1.0 }
 0x314   :  { %v1094_v10 = vrot.slane %v1087_v9, %v1093_v8 }
 0x316   :  { %1097 = vst.msk [vmem:[#allocation8] sm:$0x1] %vm1096_vm7, %v1094_v10 }
 0x317   :  { %1507 = shalt.err (!%p1504_p6)
}
 0x318   :  { %s1508_s15 = scalar_lea.hbm %s1668_s7, 16 }
 0x319   :  { %p1509_p7 = scmp.ne.s32.totalorder %s1668_s7, %s1508_s15  ;;  %p1512_p8 = scmp.lt.u32.totalorder %s1508_s15, %s1668_s7 }
 0x31b   :  { %p1514_p9 = pnand %p1512_p8, %p1509_p7 }
 0x31d   :  { %1517 = shalt.err (!%p1514_p9)
}
 0x31e   :  { %1107 = dma.vmem_to_hbm [thread:$0]  %s1105_s11, 16, %s1668_s7, [#allocation5]  }
 0x31f   :  { %1522 = dma.done.wait [#allocation5], 16  }
 0x320   :  { %1523 = vsyncadd [#allocation5], 4294967280 }
 0x321   :  { %1111 = vsyncpa [#allocation4], 1 }
 0x322   :  { %1112 = vsyncpa [#allocation7], 1 }
 0x323   :  { %1113 = vsyncpa [#allocation5], 1 }

</bundles_post_ra>
